<compile_context>
chip_gen: v6e
topology: v6e:2x2x1
jax: 0.10.0
libtpu: 0.0.40
codegen_flags: <defaults>
</compile_context>

<pallas_src>
from typing import NamedTuple, Optional

import jax
import jax.numpy as jnp
from jax.experimental import pallas as pl
from jax.experimental.pallas import tpu as pltpu


class RayBundle(NamedTuple):
    origins: jax.Array                          # (N, 3)
    directions: jax.Array                       # (N, 3)
    sample_points: Optional[jax.Array] = None   # (N, P, 3)
    sample_lengths: Optional[jax.Array] = None  # (N, P, 1)


def _raysample_kernel(lhs_ref, aux_ref, pts_ref):
    # lhs_ref : (TN, 32) bf16 -- exact hi/mid/lo bf16 splits of o and d, packed:
    #             cols 0..8   : o_hi_c, o_mid_c, o_lo_c         (pair with m_c)
    #             cols 9..17  : d_hi_c, d_mid_c, d_lo_c         (pair with z_hi*m_c)
    #             cols 18..23 : d_hi_c, d_mid_c                 (pair with z_mid*m_c)
    #             cols 24..26 : d_hi_c                          (pair with z_lo*m_c)
    #             cols 27..31 : zeros
    # aux_ref : (32, L) bf16 grid-invariant table, L = 3*P, lane l = 3*p + c.
    # pts_ref : (TN, L) f32 == row-major flat layout of (TN, P, 3).
    #
    # One bf16 MXU pass with f32 accumulation computes, per lane (p, c):
    #   o_c + d_c * z_p   to within ~2 f32 ulps (all operands are exact bf16
    # pieces of the original f32 values; only ~2^-24-relative cross terms are
    # dropped).  The MXU does the channel interleave "for free" (vex slot),
    # leaving the vst slot / output DMA as the only limiter.
    pts_ref[...] = jnp.dot(lhs_ref[...], aux_ref[...],
                           preferred_element_type=jnp.float32)


def _round_up(x: int, m: int) -> int:
    return ((x + m - 1) // m) * m


def _split3_bf16(x):
    """Exact 3-way bf16 split of an f32 array: hi + mid + lo == x (normal range)."""
    x = x.astype(jnp.float32)
    hi = x.astype(jnp.bfloat16)
    r1 = x - hi.astype(jnp.float32)
    mid = r1.astype(jnp.bfloat16)
    lo = (r1 - mid.astype(jnp.float32)).astype(jnp.bfloat16)
    return hi, mid, lo


def _choose_ray_tile(n_rays: int, out_row_bytes: int, lhs_row_bytes: int,
                     aux_bytes: int) -> int:
    # Target ~12 MiB output blocks; keep the whole double-buffered working set
    # (2x out + 2x lhs + 2x aux) comfortably under the 32 MiB scoped-VMEM limit
    # we request explicitly (OK on v5e/v6e 128 MiB and v7x 64 MiB/TC physical).
    budget = (26 << 20) - 2 * aux_bytes
    rows_by_vmem = max(8, (budget // (2 * (out_row_bytes + lhs_row_bytes))) // 8 * 8)
    rows_cap = _round_up(max(n_rays, 1), 8)
    tile = min(rows_by_vmem, rows_cap)
    # Prefer >= 4 grid steps (v7x megacore sharding across both TCs + pipelined
    # output write-back), but never shrink below 512 rows just to create steps.
    min_useful = min(512, rows_cap)
    by_steps = max(min_useful, _round_up(pl.cdiv(n_rays, 4), 8))
    return max(8, min(tile, by_steps))


def stratified_raysampler(ray_bundle: RayBundle, *, n_pts_per_ray: int,
                          min_depth: float, max_depth: float) -> RayBundle:
    origins = ray_bundle.origins.astype(jnp.float32)      # (N, 3)
    directions = ray_bundle.directions.astype(jnp.float32)  # (N, 3)
    n_rays = origins.shape[0]
    P = n_pts_per_ray
    L = 3 * P          # interleaved lane index l = 3*p + c (row-major (P, 3))

    # TODO(synk): the reference module is deterministic (plain linspace); if a
    # training-mode stratified jitter is ever needed, add pltpu.prng_* in-kernel.
    z = jnp.linspace(min_depth, max_depth, P, dtype=jnp.float32)     # (P,)

    # ---- packed MXU operands (tiny; built once by XLA outside the kernel) ----
    o_hi, o_mid, o_lo = _split3_bf16(origins)
    d_hi, d_mid, d_lo = _split3_bf16(directions)
    lhs = jnp.concatenate(
        [o_hi, o_mid, o_lo,                     # cols 0..8   <-> rows m_c
         d_hi, d_mid, d_lo,                     # cols 9..17  <-> rows z_hi*m_c
         d_hi, d_mid,                           # cols 18..23 <-> rows z_mid*m_c
         d_hi,                                  # cols 24..26 <-> rows z_lo*m_c
         jnp.zeros((n_rays, 5), jnp.bfloat16)], axis=1)              # (N, 32)

    z_hi, z_mid, z_lo = _split3_bf16(z)
    lane = jnp.arange(L)
    p_id, c_id = lane // 3, lane % 3
    onehot = (c_id[None, :] == jnp.arange(3)[:, None]).astype(jnp.float32)  # (3, L)

    def _zrows(zp):  # (P,) bf16-valued -> (3, L) bf16 = z_p * m_c (exact: 0/1 mask)
        return (onehot * zp.astype(jnp.float32)[p_id][None, :]).astype(jnp.bfloat16)

    m_bf = onehot.astype(jnp.bfloat16)
    aux = jnp.concatenate(
        [m_bf, m_bf, m_bf,
         _zrows(z_hi), _zrows(z_hi), _zrows(z_hi),
         _zrows(z_mid), _zrows(z_mid),
         _zrows(z_lo),
         jnp.zeros((5, L), jnp.bfloat16)], axis=0)                   # (32, L)

    # ---- tiling (generation-aware VMEM budget, no N/P padding) ----
    out_row_bytes = L * 4
    lhs_row_bytes = 32 * 2
    aux_bytes = 32 * L * 2
    tile = _choose_ray_tile(n_rays, out_row_bytes, lhs_row_bytes, aux_bytes)
    grid = (pl.cdiv(n_rays, tile),)        # ragged last ray block handled by Pallas

    pts_flat = pl.pallas_call(
        _raysample_kernel,
        out_shape=jax.ShapeDtypeStruct((n_rays, L), jnp.float32),
        grid_spec=pltpu.PrefetchScalarGridSpec(
            num_scalar_prefetch=0,
            grid=grid,
            in_specs=[
                pl.BlockSpec((tile, 32), lambda i: (i, 0)),
                pl.BlockSpec((32, L), lambda i: (0, 0)),   # grid-invariant table
            ],
            out_specs=pl.BlockSpec((tile, L), lambda i: (i, 0)),
        ),
        compiler_params=pltpu.CompilerParams(
            dimension_semantics=("parallel",),
            vmem_limit_bytes=32 * 1024 * 1024),
        cost_estimate=pl.CostEstimate(
            flops=2 * n_rays * 32 * L,
            transcendentals=0,
            bytes_accessed=n_rays * 32 * 2 + 32 * L * 2 + n_rays * L * 4),
    )(lhs, aux)

    # (N, 3*P) is already the row-major flat layout of (N, P, 3): this reshape is
    # free (no transpose, no padding slice, no extra HBM pass).
    sample_points = pts_flat.reshape(n_rays, P, 3)

    # Lengths are a pure broadcast of z -- not materialized by the kernel; XLA
    # fuses this into downstream consumers (~25% less kernel HBM write traffic).
    sample_lengths = jnp.broadcast_to(z[None, :, None], (n_rays, P, 1))

    return ray_bundle._replace(sample_points=sample_points,
                               sample_lengths=sample_lengths)


if __name__ == "__main__":
    # cfg (deterministic, in-script)
    n_pts_per_ray = 128
    min_depth = 0.1
    max_depth = 5.0
    n_rays = 256

    key = jax.random.PRNGKey(0)
    k_o, k_d = jax.random.split(key)
    origins = jax.random.normal(k_o, (n_rays, 3), dtype=jnp.float32)
    directions = jax.random.normal(k_d, (n_rays, 3), dtype=jnp.float32)
    directions = directions / jnp.linalg.norm(directions, axis=-1, keepdims=True)

    bundle = RayBundle(origins=origins, directions=directions)
    out = stratified_raysampler(bundle, n_pts_per_ray=n_pts_per_ray,
                                min_depth=min_depth, max_depth=max_depth)
    jax.block_until_ready(out.sample_points)
    jax.block_until_ready(out.sample_lengths)

    # pure-JAX reference
    z = jnp.linspace(min_depth, max_depth, n_pts_per_ray, dtype=jnp.float32)
    ref_pts = origins[:, None, :] + directions[:, None, :] * z[None, :, None]
    ref_len = jnp.broadcast_to(z[None, :, None], (n_rays, n_pts_per_ray, 1))

    assert out.sample_points.shape == (n_rays, n_pts_per_ray, 3)
    assert out.sample_lengths.shape == (n_rays, n_pts_per_ray, 1)
    # MXU f32 accumulation of the exact bf16 splits agrees with the pure-f32
    # reference to within a couple of f32 ulps at |value| ~ max_depth.
    assert jnp.allclose(out.sample_points, ref_pts, atol=2e-6, rtol=2e-6)
    assert jnp.allclose(out.sample_lengths, ref_len, atol=0.0, rtol=0.0)

    # Ragged case: N not a multiple of 8, P not a multiple of 128 -> exercises the
    # partial last ray block and the exact (non-padded) lane width.
    n2, p2 = 50, 48
    o2 = jax.random.normal(jax.random.PRNGKey(1), (n2, 3), dtype=jnp.float32)
    d2 = jax.random.normal(jax.random.PRNGKey(2), (n2, 3), dtype=jnp.float32)
    d2 = d2 / jnp.linalg.norm(d2, axis=-1, keepdims=True)
    out2 = stratified_raysampler(RayBundle(origins=o2, directions=d2),
                                 n_pts_per_ray=p2, min_depth=min_depth,
                                 max_depth=max_depth)
    jax.block_until_ready(out2.sample_points)
    z2 = jnp.linspace(min_depth, max_depth, p2, dtype=jnp.float32)
    ref2 = o2[:, None, :] + d2[:, None, :] * z2[None, :, None]
    assert out2.sample_points.shape == (n2, p2, 3)
    assert jnp.allclose(out2.sample_points, ref2, atol=2e-6, rtol=2e-6)

    print("KERNEL_OK")
</pallas_src>

<mosaic_0001>
module attributes {stable_mosaic.version = 11 : i64} {
  func.func @_raysample_kernel(%arg0: i32, %arg1: memref<256x32xbf16, #tpu.memory_space<vmem>>, %arg2: memref<32x384xbf16, #tpu.memory_space<vmem>>, %arg3: memref<256x384xf32, #tpu.memory_space<vmem>>) attributes {dimension_semantics = [#tpu.dimension_semantics<parallel>], iteration_bounds = array<i64: 1>, scalar_prefetch = 0 : i64, scratch_operands = 0 : i64, tpu.core_type = #tpu.core_type<tc>, window_params = [{transform_indices = @transform_0, window_bounds = array<i64: 256, 32>}, {pipeline_mode = #tpu.pipeline_mode<synchronous>, transform_indices = @transform_1, window_bounds = array<i64: 32, 384>}, {transform_indices = @transform_2, window_bounds = array<i64: 256, 384>}]} {
    %c0 = arith.constant 0 : index
    %c0_0 = arith.constant 0 : index
    %0 = vector.load %arg1[%c0, %c0_0] : memref<256x32xbf16, #tpu.memory_space<vmem>>, vector<256x32xbf16>
    %c0_1 = arith.constant 0 : index
    %c0_2 = arith.constant 0 : index
    %1 = vector.load %arg2[%c0_1, %c0_2] : memref<32x384xbf16, #tpu.memory_space<vmem>>, vector<32x384xbf16>
    %cst = arith.constant dense<0.000000e+00> : vector<256x384xf32>
    %2 = tpu.matmul %0, %1, %cst {dimension_numbers = #tpu.dot_dimension_numbers<[1], [0], [0], [1], [0, 0, 1, 1], [], []>} : vector<256x32xbf16>, vector<32x384xbf16>, vector<256x384xf32> -> vector<256x384xf32>
    %c0_3 = arith.constant 0 : index
    %c0_4 = arith.constant 0 : index
    %3 = vector.load %arg3[%c0_3, %c0_4] : memref<256x384xf32, #tpu.memory_space<vmem>>, vector<256x384xf32>
    tpu.vector_store %arg3[%c0_3, %c0_4], %2 {strides = array<i32>} : memref<256x384xf32, #tpu.memory_space<vmem>>, vector<256x384xf32>,
    return
  }
  func.func @transform_0(%arg0: i32) -> (i32, i32) {
    %c0_i32 = arith.constant 0 : i32
    %c0_i32_0 = arith.constant 0 : i32
    return %arg0, %c0_i32 : i32, i32
  }
  func.func @transform_1(%arg0: i32) -> (i32, i32) {
    %c0_i32 = arith.constant 0 : i32
    %c0_i32_0 = arith.constant 0 : i32
    %c0_i32_1 = arith.constant 0 : i32
    return %c0_i32, %c0_i32_0 : i32, i32
  }
  func.func @transform_2(%arg0: i32) -> (i32, i32) {
    %c0_i32 = arith.constant 0 : i32
    %c0_i32_0 = arith.constant 0 : i32
    return %arg0, %c0_i32 : i32, i32
  }
}

</mosaic_0001>

<bundles_post_ra>
// kernel: tpu_custom_call.1
= control target key start
LH: loop header
LB: loop body
LE: loop exit
PB: predicated region body
PF: predicated region fallthrough
CT: control target
= control target key end

     0   :  { %v842_v2 = vmov 0   ;;  %vm165_vm0 = vcmask 261120   ;;  %s982_s0 = inlined_call_operand.vmem [shape: bf16[256,32], index: 0, kind: input, shape index: {}]   ;;  %s983_s1 = inlined_call_operand.vmem [shape: bf16[32,384], index: 1, kind: input, shape index: {}]   ;;  %s984_s2 = inlined_call_operand.hbm [shape: f32[256,384], index: 2, kind: output, shape index: {}]  }
   0x1   :  { %v796_v0 = vld [vmem:[%s983_s1 + $0x1c] ss:$12 sps:$4 sm:$0xff]   ;;  %v798_v1 = vld [vmem:[%s983_s1 + $0x18] ss:$12 sps:$4 sm:$0xff]   ;;  %246 = vmatprep.mubr.bf16.mxu0 %v842_v2  ;;  %366 = vmatprep.mubr.bf16.mxu1 %v842_v2  ;;  %v801_v4 = vld [vmem:[%s983_s1] ss:$12 sps:$4 sm:$0xff]  }
   0x2   :  { %226 = vmatprep.subr.bf16.mxu0 %v796_v0  ;;  %788 = vmatprep.subr.bf16.mxu1 %v796_v0  ;;  %v799_v3 = vld [vmem:[%s983_s1 + $0x4] ss:$12 sps:$4 sm:$0xff]   ;;  %v804_v6 = vld [vmem:[%s983_s1 + $0x20] ss:$12 sps:$4 sm:$0xff]   ;;  %v809_v8 = vld [vmem:[%s983_s1 + $0x8] ss:$12 sps:$4 sm:$0xff]  }
   0x3   :  { %227 = vmatpush1.bf16.msra.mxu0 %v798_v1  ;;  %790 = vmatpush1.bf16.msra.mxu1 %v798_v1  ;;  %v802_v5 = vld [vmem:[%s982_s0] sm:$0xff]   ;;  %v805_v9 = vld [vmem:[%s982_s0 + $0x8] sm:$0xff]  }
   0x4   :  { %228 = vmatprep.subr.bf16.mxu0 %v799_v3  ;;  %789 = vmatprep.subr.bf16.mxu1 %v799_v3  ;;  %v884_v7 = vld [vmem:[%s982_s0 + $0x60] sm:$0xff]   ;;  %v806_v10 = vld [vmem:[%s982_s0 + $0x68] sm:$0xff]  }
   0x7   :  { %229 = vmatpush1.bf16.msra.mxu0 %v801_v4  ;;  %791 = vmatpush1.bf16.msra.mxu1 %v801_v4 }
   0x8   :  { %752 = vmatprep.subr.bf16.mxu1 %v804_v6 }
   0xa   :  { %702 = vmatmul.mubr.msk.bf16.vlgmr.msra.gmra.mxu0 %vm165_vm0, %v802_v5  ;;  %714 = vmatmul.mubr.msk.bf16.vlgmr.msra.gmra.mxu1 %vm165_vm0, %v884_v7 }
   0xb   :  { %753 = vmatpush3.bf16.msra.mxu1 %v804_v6  ;;  %256 = vmatprep.mubr.bf16.mxu0 %v842_v2 }
   0xc   :  { %376 = vmatprep.mubr.bf16.mxu1 %v842_v2  ;;  %754 = vmatprep.subr.bf16.mxu1 %v809_v8 }
   0xf   :  { %755 = vmatpush3.bf16.msra.mxu1 %v809_v8 }
  0x12   :  { %703 = vmatmul.mubr.msk.bf16.gmra.mxu0 %vm165_vm0, %v805_v9  ;;  %715 = vmatmul.mubr.msk.bf16.gmra.mxu1 %vm165_vm0, %v806_v10 }
  0x13   :  { %266 = vmatprep.mubr.bf16.mxu0 %v842_v2  ;;  %386 = vmatprep.mubr.bf16.mxu1 %v842_v2 }
  0x14   :  { %7 = vsyncpa [#allocation3], 0  ;;  %v807_v11 = vld [vmem:[%s982_s0 + $0x10] sm:$0xff]   ;;  %v810_v13 = vld [vmem:[%s982_s0 + $0x18] sm:$0xff]  }
  0x15   :  { %v808_v12 = vld [vmem:[%s982_s0 + $0x70] sm:$0xff]   ;;  %v811_v14 = vld [vmem:[%s982_s0 + $0x78] sm:$0xff]   ;;  %v812_v15 = vld [vmem:[%s982_s0 + $0x20] sm:$0xff]  }
  0x16   :  { %v813_v16 = vld [vmem:[%s982_s0 + $0x28] sm:$0xff]   ;;  %v814_v17 = vld [vmem:[%s982_s0 + $0x30] sm:$0xff]   ;;  %v815_v18 = vld [vmem:[%s982_s0 + $0x38] sm:$0xff]  }
  0x17   :  { %v816_v19 = vld [vmem:[%s982_s0 + $0x40] sm:$0xff]   ;;  %v817_v20 = vld [vmem:[%s982_s0 + $0x48] sm:$0xff]   ;;  %v818_v21 = vld [vmem:[%s982_s0 + $0x50] sm:$0xff]  }
  0x18   :  { %v819_v22 = vld [vmem:[%s982_s0 + $0x58] sm:$0xff]   ;;  %s843_s0 = smov [#allocation2]  }
  0x19   :  { %s669_s24 = sshll.u32 %s843_s0, 4  ;;  %s670_s24 = int_to_ptr.vmem [resolvable:$true] %s669_s24 }
  0x1a   :  { %704 = vmatmul.mubr.msk.bf16.gmra.mxu0 %vm165_vm0, %v807_v11  ;;  %716 = vmatmul.mubr.msk.bf16.gmra.mxu1 %vm165_vm0, %v808_v12  ;;  %s820_s25 = scalar_lea.vmem %s670_s24, 12288  ;;  %p825_p1 = scmp.lt.s32.totalorder %s670_s24, %s670_s24 }
  0x1b   :  { %276 = vmatprep.mubr.bf16.mxu0 %v842_v2  ;;  %396 = vmatprep.mubr.bf16.mxu1 %v842_v2  ;;  %p821_p0 = scmp.ne.s32.totalorder %s670_s24, %s820_s25  ;;  %p826_p2 = scmp.lt.s32.totalorder %s820_s25, %s820_s25 }
  0x1d   :  { %p827_p3 = por %p826_p2, %p825_p1 }
  0x1f   :  { %p828_p4 = pnand %p827_p3, %p821_p0 }
  0x22   :  { %705 = vmatmul.mubr.msk.bf16.gmra.mxu0 %vm165_vm0, %v810_v13  ;;  %717 = vmatmul.mubr.msk.bf16.gmra.mxu1 %vm165_vm0, %v811_v14 }
  0x23   :  { %286 = vmatprep.mubr.bf16.mxu0 %v842_v2  ;;  %756 = vmatprep.mubr.msk.bf16.mxu1 %vm165_vm0, %v802_v5 }
  0x2a   :  { %706 = vmatmul.mubr.msk.bf16.gmra.mxu0 %vm165_vm0, %v812_v15  ;;  %757 = vmatmul.mubr.msk.bf16.vlgmr.msra.gmra.mxu1 %vm165_vm0, %v805_v9 }
  0x2b   :  { %296 = vmatprep.mubr.bf16.mxu0 %v842_v2  ;;  %760 = vmatprep.mubr.msk.bf16.mxu1 %vm165_vm0, %v807_v11 }
  0x32   :  { %707 = vmatmul.mubr.msk.bf16.gmra.mxu0 %vm165_vm0, %v813_v16  ;;  %761 = vmatmul.mubr.msk.bf16.gmra.mxu1 %vm165_vm0, %v810_v13 }
  0x33   :  { %306 = vmatprep.mubr.bf16.mxu0 %v842_v2  ;;  %764 = vmatprep.mubr.msk.bf16.mxu1 %vm165_vm0, %v812_v15 }
  0x3a   :  { %708 = vmatmul.mubr.msk.bf16.gmra.mxu0 %vm165_vm0, %v814_v17  ;;  %765 = vmatmul.mubr.msk.bf16.gmra.mxu1 %vm165_vm0, %v813_v16 }
  0x3b   :  { %316 = vmatprep.mubr.bf16.mxu0 %v842_v2  ;;  %768 = vmatprep.mubr.msk.bf16.mxu1 %vm165_vm0, %v814_v17 }
  0x42   :  { %709 = vmatmul.mubr.msk.bf16.gmra.mxu0 %vm165_vm0, %v815_v18  ;;  %769 = vmatmul.mubr.msk.bf16.gmra.mxu1 %vm165_vm0, %v815_v18 }
  0x43   :  { %326 = vmatprep.mubr.bf16.mxu0 %v842_v2  ;;  %772 = vmatprep.mubr.msk.bf16.mxu1 %vm165_vm0, %v816_v19 }
  0x4a   :  { %710 = vmatmul.mubr.msk.bf16.gmra.mxu0 %vm165_vm0, %v816_v19  ;;  %773 = vmatmul.mubr.msk.bf16.gmra.mxu1 %vm165_vm0, %v817_v20 }
  0x4b   :  { %336 = vmatprep.mubr.bf16.mxu0 %v842_v2  ;;  %776 = vmatprep.mubr.msk.bf16.mxu1 %vm165_vm0, %v818_v21 }
  0x52   :  { %711 = vmatmul.mubr.msk.bf16.gmra.mxu0 %vm165_vm0, %v817_v20  ;;  %777 = vmatmul.mubr.msk.bf16.gmra.mxu1 %vm165_vm0, %v819_v22 }
  0x53   :  { %346 = vmatprep.mubr.bf16.mxu0 %v842_v2  ;;  %780 = vmatprep.mubr.msk.bf16.mxu1 %vm165_vm0, %v884_v7 }
  0x5a   :  { %712 = vmatmul.mubr.msk.bf16.gmra.mxu0 %vm165_vm0, %v818_v21  ;;  %781 = vmatmul.mubr.msk.bf16.gmra.mxu1 %vm165_vm0, %v806_v10 }
  0x5b   :  { %356 = vmatprep.mubr.bf16.mxu0 %v842_v2  ;;  %784 = vmatprep.mubr.msk.bf16.mxu1 %vm165_vm0, %v808_v12 }
  0x62   :  { %713 = vmatmul.mubr.msk.bf16.gmra.mxu0 %vm165_vm0, %v819_v22  ;;  %785 = vmatmul.mubr.msk.bf16.gmra.mxu1 %vm165_vm0, %v811_v14 }
  0xca   :  { %v248_v23 = vpop.f32.mrf.mxu0  ;;  %v368_v24 = vpop.f32.mrf.mxu1 }
  0xcb   :  { %568 = vst [vmem:[#allocation2] sm:$0xff] %v248_v23  ;;  %640 = vst [vmem:[#allocation2 + $0x240] sm:$0xff] %v368_v24 }
  0xcc   :  { %v250_v25 = vpop.f32.mrf.mxu0  ;;  %v370_v26 = vpop.f32.mrf.mxu1 }
  0xcd   :  { %569 = vst [vmem:[#allocation2 + $0x8] sm:$0xff] %v250_v25  ;;  %641 = vst [vmem:[#allocation2 + $0x248] sm:$0xff] %v370_v26 }
  0xce   :  { %v252_v27 = vpop.f32.mrf.mxu0  ;;  %v372_v28 = vpop.f32.mrf.mxu1 }
  0xcf   :  { %571 = vst [vmem:[#allocation2 + $0x18] sm:$0xff] %v252_v27  ;;  %643 = vst [vmem:[#allocation2 + $0x258] sm:$0xff] %v372_v28 }
  0xd0   :  { %v254_v29 = vpop.f32.mrf.mxu0  ;;  %v374_v30 = vpop.f32.mrf.mxu1 }
  0xd1   :  { %572 = vst [vmem:[#allocation2 + $0x20] sm:$0xff] %v254_v29  ;;  %644 = vst [vmem:[#allocation2 + $0x260] sm:$0xff] %v374_v30 }
  0xd2   :  { %v258_v31 = vpop.f32.mrf.mxu0  ;;  %v378_v32 = vpop.f32.mrf.mxu1 }
  0xd3   :  { %574 = vst [vmem:[#allocation2 + $0x30] sm:$0xff] %v258_v31  ;;  %646 = vst [vmem:[#allocation2 + $0x270] sm:$0xff] %v378_v32 }
  0xd4   :  { %v260_v33 = vpop.f32.mrf.mxu0  ;;  %v380_v34 = vpop.f32.mrf.mxu1 }
  0xd5   :  { %575 = vst [vmem:[#allocation2 + $0x38] sm:$0xff] %v260_v33  ;;  %647 = vst [vmem:[#allocation2 + $0x278] sm:$0xff] %v380_v34 }
  0xd6   :  { %v262_v35 = vpop.f32.mrf.mxu0  ;;  %v382_v36 = vpop.f32.mrf.mxu1 }
  0xd7   :  { %577 = vst [vmem:[#allocation2 + $0x48] sm:$0xff] %v262_v35  ;;  %649 = vst [vmem:[#allocation2 + $0x288] sm:$0xff] %v382_v36 }
  0xd8   :  { %v264_v37 = vpop.f32.mrf.mxu0  ;;  %v384_v38 = vpop.f32.mrf.mxu1 }
  0xd9   :  { %578 = vst [vmem:[#allocation2 + $0x50] sm:$0xff] %v264_v37  ;;  %650 = vst [vmem:[#allocation2 + $0x290] sm:$0xff] %v384_v38 }
  0xda   :  { %v268_v39 = vpop.f32.mrf.mxu0  ;;  %v388_v40 = vpop.f32.mrf.mxu1 }
  0xdb   :  { %580 = vst [vmem:[#allocation2 + $0x60] sm:$0xff] %v268_v39  ;;  %652 = vst [vmem:[#allocation2 + $0x2a0] sm:$0xff] %v388_v40 }
  0xdc   :  { %v270_v41 = vpop.f32.mrf.mxu0  ;;  %v390_v42 = vpop.f32.mrf.mxu1 }
  0xdd   :  { %581 = vst [vmem:[#allocation2 + $0x68] sm:$0xff] %v270_v41  ;;  %653 = vst [vmem:[#allocation2 + $0x2a8] sm:$0xff] %v390_v42 }
  0xde   :  { %v272_v43 = vpop.f32.mrf.mxu0  ;;  %v392_v44 = vpop.f32.mrf.mxu1 }
  0xdf   :  { %583 = vst [vmem:[#allocation2 + $0x78] sm:$0xff] %v272_v43  ;;  %655 = vst [vmem:[#allocation2 + $0x2b8] sm:$0xff] %v392_v44 }
  0xe0   :  { %v274_v45 = vpop.f32.mrf.mxu0  ;;  %v394_v46 = vpop.f32.mrf.mxu1 }
  0xe1   :  { %584 = vst [vmem:[#allocation2 + $0x80] sm:$0xff] %v274_v45  ;;  %656 = vst [vmem:[#allocation2 + $0x2c0] sm:$0xff] %v394_v46 }
  0xe2   :  { %v278_v47 = vpop.f32.mrf.mxu0  ;;  %v398_v48 = vpop.f32.mrf.mxu1 }
  0xe3   :  { %586 = vst [vmem:[#allocation2 + $0x90] sm:$0xff] %v278_v47  ;;  %658 = vst [vmem:[#allocation2 + $0x2d0] sm:$0xff] %v398_v48 }
  0xe4   :  { %v280_v49 = vpop.f32.mrf.mxu0  ;;  %v400_v50 = vpop.f32.mrf.mxu1 }
  0xe5   :  { %587 = vst [vmem:[#allocation2 + $0x98] sm:$0xff] %v280_v49  ;;  %659 = vst [vmem:[#allocation2 + $0x2d8] sm:$0xff] %v400_v50 }
  0xe6   :  { %v282_v51 = vpop.f32.mrf.mxu0  ;;  %v402_v52 = vpop.f32.mrf.mxu1 }
  0xe7   :  { %589 = vst [vmem:[#allocation2 + $0xa8] sm:$0xff] %v282_v51  ;;  %661 = vst [vmem:[#allocation2 + $0x2e8] sm:$0xff] %v402_v52 }
  0xe8   :  { %v284_v53 = vpop.f32.mrf.mxu0  ;;  %v404_v54 = vpop.f32.mrf.mxu1 }
  0xe9   :  { %590 = vst [vmem:[#allocation2 + $0xb0] sm:$0xff] %v284_v53  ;;  %662 = vst [vmem:[#allocation2 + $0x2f0] sm:$0xff] %v404_v54 }
  0xea   :  { %v288_v55 = vpop.f32.mrf.mxu0  ;;  %v758_v56 = vpop.f32.mrf.mxu1 }
  0xeb   :  { %592 = vst [vmem:[#allocation2 + $0xc0] sm:$0xff] %v288_v55  ;;  %576 = vst [vmem:[#allocation2 + $0x40] sm:$0xff] %v758_v56 }
  0xec   :  { %v290_v57 = vpop.f32.mrf.mxu0  ;;  %v441_v58 = vpop.f32.mrf.mxu1 }
  0xed   :  { %593 = vst [vmem:[#allocation2 + $0xc8] sm:$0xff] %v290_v57  ;;  %570 = vst [vmem:[#allocation2 + $0x10] sm:$0xff] %v441_v58 }
  0xee   :  { %v292_v59 = vpop.f32.mrf.mxu0  ;;  %v759_v60 = vpop.f32.mrf.mxu1 }
  0xef   :  { %595 = vst [vmem:[#allocation2 + $0xd8] sm:$0xff] %v292_v59  ;;  %579 = vst [vmem:[#allocation2 + $0x58] sm:$0xff] %v759_v60 }
  0xf0   :  { %v294_v61 = vpop.f32.mrf.mxu0  ;;  %v444_v62 = vpop.f32.mrf.mxu1 }
  0xf1   :  { %596 = vst [vmem:[#allocation2 + $0xe0] sm:$0xff] %v294_v61  ;;  %573 = vst [vmem:[#allocation2 + $0x28] sm:$0xff] %v444_v62 }
  0xf2   :  { %v298_v63 = vpop.f32.mrf.mxu0  ;;  %v762_v0 = vpop.f32.mrf.mxu1 }
  0xf3   :  { %598 = vst [vmem:[#allocation2 + $0xf0] sm:$0xff] %v298_v63  ;;  %588 = vst [vmem:[#allocation2 + $0xa0] sm:$0xff] %v762_v0 }
  0xf4   :  { %v300_v1 = vpop.f32.mrf.mxu0  ;;  %v457_v2 = vpop.f32.mrf.mxu1 }
  0xf5   :  { %599 = vst [vmem:[#allocation2 + $0xf8] sm:$0xff] %v300_v1  ;;  %582 = vst [vmem:[#allocation2 + $0x70] sm:$0xff] %v457_v2 }
  0xf6   :  { %v302_v3 = vpop.f32.mrf.mxu0  ;;  %v763_v4 = vpop.f32.mrf.mxu1 }
  0xf7   :  { %601 = vst [vmem:[#allocation2 + $0x108] sm:$0xff] %v302_v3  ;;  %591 = vst [vmem:[#allocation2 + $0xb8] sm:$0xff] %v763_v4 }
  0xf8   :  { %v304_v5 = vpop.f32.mrf.mxu0  ;;  %v460_v6 = vpop.f32.mrf.mxu1 }
  0xf9   :  { %602 = vst [vmem:[#allocation2 + $0x110] sm:$0xff] %v304_v5  ;;  %585 = vst [vmem:[#allocation2 + $0x88] sm:$0xff] %v460_v6 }
  0xfa   :  { %v308_v7 = vpop.f32.mrf.mxu0  ;;  %v766_v8 = vpop.f32.mrf.mxu1 }
  0xfb   :  { %604 = vst [vmem:[#allocation2 + $0x120] sm:$0xff] %v308_v7  ;;  %600 = vst [vmem:[#allocation2 + $0x100] sm:$0xff] %v766_v8 }
  0xfc   :  { %v310_v9 = vpop.f32.mrf.mxu0  ;;  %v473_v10 = vpop.f32.mrf.mxu1 }
  0xfd   :  { %605 = vst [vmem:[#allocation2 + $0x128] sm:$0xff] %v310_v9  ;;  %594 = vst [vmem:[#allocation2 + $0xd0] sm:$0xff] %v473_v10 }
  0xfe   :  { %v312_v11 = vpop.f32.mrf.mxu0  ;;  %v767_v12 = vpop.f32.mrf.mxu1 }
  0xff   :  { %607 = vst [vmem:[#allocation2 + $0x138] sm:$0xff] %v312_v11  ;;  %603 = vst [vmem:[#allocation2 + $0x118] sm:$0xff] %v767_v12 }
 0x100   :  { %v314_v13 = vpop.f32.mrf.mxu0  ;;  %v476_v14 = vpop.f32.mrf.mxu1 }
 0x101   :  { %608 = vst [vmem:[#allocation2 + $0x140] sm:$0xff] %v314_v13  ;;  %597 = vst [vmem:[#allocation2 + $0xe8] sm:$0xff] %v476_v14 }
 0x102   :  { %v318_v15 = vpop.f32.mrf.mxu0  ;;  %v770_v16 = vpop.f32.mrf.mxu1 }
 0x103   :  { %610 = vst [vmem:[#allocation2 + $0x150] sm:$0xff] %v318_v15  ;;  %612 = vst [vmem:[#allocation2 + $0x160] sm:$0xff] %v770_v16 }
 0x104   :  { %v320_v17 = vpop.f32.mrf.mxu0  ;;  %v489_v18 = vpop.f32.mrf.mxu1 }
 0x105   :  { %611 = vst [vmem:[#allocation2 + $0x158] sm:$0xff] %v320_v17  ;;  %606 = vst [vmem:[#allocation2 + $0x130] sm:$0xff] %v489_v18 }
 0x106   :  { %v322_v19 = vpop.f32.mrf.mxu0  ;;  %v771_v20 = vpop.f32.mrf.mxu1 }
 0x107   :  { %613 = vst [vmem:[#allocation2 + $0x168] sm:$0xff] %v322_v19  ;;  %615 = vst [vmem:[#allocation2 + $0x178] sm:$0xff] %v771_v20 }
 0x108   :  { %v324_v21 = vpop.f32.mrf.mxu0  ;;  %v492_v22 = vpop.f32.mrf.mxu1 }
 0x109   :  { %614 = vst [vmem:[#allocation2 + $0x170] sm:$0xff] %v324_v21  ;;  %609 = vst [vmem:[#allocation2 + $0x148] sm:$0xff] %v492_v22 }
 0x10a   :  { %v328_v23 = vpop.f32.mrf.mxu0  ;;  %v774_v24 = vpop.f32.mrf.mxu1 }
 0x10b   :  { %616 = vst [vmem:[#allocation2 + $0x180] sm:$0xff] %v328_v23  ;;  %624 = vst [vmem:[#allocation2 + $0x1c0] sm:$0xff] %v774_v24 }
 0x10c   :  { %v330_v25 = vpop.f32.mrf.mxu0  ;;  %v505_v26 = vpop.f32.mrf.mxu1 }
 0x10d   :  { %617 = vst [vmem:[#allocation2 + $0x188] sm:$0xff] %v330_v25  ;;  %618 = vst [vmem:[#allocation2 + $0x190] sm:$0xff] %v505_v26 }
 0x10e   :  { %v332_v27 = vpop.f32.mrf.mxu0  ;;  %v775_v28 = vpop.f32.mrf.mxu1 }
 0x10f   :  { %619 = vst [vmem:[#allocation2 + $0x198] sm:$0xff] %v332_v27  ;;  %627 = vst [vmem:[#allocation2 + $0x1d8] sm:$0xff] %v775_v28 }
 0x110   :  { %v334_v29 = vpop.f32.mrf.mxu0  ;;  %v508_v30 = vpop.f32.mrf.mxu1 }
 0x111   :  { %620 = vst [vmem:[#allocation2 + $0x1a0] sm:$0xff] %v334_v29  ;;  %621 = vst [vmem:[#allocation2 + $0x1a8] sm:$0xff] %v508_v30 }
 0x112   :  { %v338_v31 = vpop.f32.mrf.mxu0  ;;  %v778_v32 = vpop.f32.mrf.mxu1 }
 0x113   :  { %622 = vst [vmem:[#allocation2 + $0x1b0] sm:$0xff] %v338_v31  ;;  %636 = vst [vmem:[#allocation2 + $0x220] sm:$0xff] %v778_v32 }
 0x114   :  { %v340_v33 = vpop.f32.mrf.mxu0  ;;  %v521_v34 = vpop.f32.mrf.mxu1 }
 0x115   :  { %623 = vst [vmem:[#allocation2 + $0x1b8] sm:$0xff] %v340_v33  ;;  %630 = vst [vmem:[#allocation2 + $0x1f0] sm:$0xff] %v521_v34 }
 0x116   :  { %v342_v35 = vpop.f32.mrf.mxu0  ;;  %v779_v36 = vpop.f32.mrf.mxu1 }
 0x117   :  { %625 = vst [vmem:[#allocation2 + $0x1c8] sm:$0xff] %v342_v35  ;;  %639 = vst [vmem:[#allocation2 + $0x238] sm:$0xff] %v779_v36 }
 0x118   :  { %v344_v37 = vpop.f32.mrf.mxu0  ;;  %v524_v38 = vpop.f32.mrf.mxu1 }
 0x119   :  { %626 = vst [vmem:[#allocation2 + $0x1d0] sm:$0xff] %v344_v37  ;;  %633 = vst [vmem:[#allocation2 + $0x208] sm:$0xff] %v524_v38 }
 0x11a   :  { %v348_v39 = vpop.f32.mrf.mxu0  ;;  %v782_v40 = vpop.f32.mrf.mxu1 }
 0x11b   :  { %628 = vst [vmem:[#allocation2 + $0x1e0] sm:$0xff] %v348_v39  ;;  %648 = vst [vmem:[#allocation2 + $0x280] sm:$0xff] %v782_v40 }
 0x11c   :  { %v350_v41 = vpop.f32.mrf.mxu0  ;;  %v537_v42 = vpop.f32.mrf.mxu1 }
 0x11d   :  { %629 = vst [vmem:[#allocation2 + $0x1e8] sm:$0xff] %v350_v41  ;;  %642 = vst [vmem:[#allocation2 + $0x250] sm:$0xff] %v537_v42 }
 0x11e   :  { %v352_v43 = vpop.f32.mrf.mxu0  ;;  %v783_v44 = vpop.f32.mrf.mxu1 }
 0x11f   :  { %631 = vst [vmem:[#allocation2 + $0x1f8] sm:$0xff] %v352_v43  ;;  %651 = vst [vmem:[#allocation2 + $0x298] sm:$0xff] %v783_v44 }
 0x120   :  { %v354_v45 = vpop.f32.mrf.mxu0  ;;  %v540_v46 = vpop.f32.mrf.mxu1 }
 0x121   :  { %632 = vst [vmem:[#allocation2 + $0x200] sm:$0xff] %v354_v45  ;;  %645 = vst [vmem:[#allocation2 + $0x268] sm:$0xff] %v540_v46 }
 0x122   :  { %v358_v47 = vpop.f32.mrf.mxu0  ;;  %v786_v48 = vpop.f32.mrf.mxu1 }
 0x123   :  { %634 = vst [vmem:[#allocation2 + $0x210] sm:$0xff] %v358_v47  ;;  %660 = vst [vmem:[#allocation2 + $0x2e0] sm:$0xff] %v786_v48 }
 0x124   :  { %v360_v49 = vpop.f32.mrf.mxu0  ;;  %v553_v50 = vpop.f32.mrf.mxu1 }
 0x125   :  { %635 = vst [vmem:[#allocation2 + $0x218] sm:$0xff] %v360_v49  ;;  %654 = vst [vmem:[#allocation2 + $0x2b0] sm:$0xff] %v553_v50 }
 0x126   :  { %v362_v51 = vpop.f32.mrf.mxu0  ;;  %v787_v52 = vpop.f32.mrf.mxu1 }
 0x127   :  { %637 = vst [vmem:[#allocation2 + $0x228] sm:$0xff] %v362_v51  ;;  %663 = vst [vmem:[#allocation2 + $0x2f8] sm:$0xff] %v787_v52 }
 0x128   :  { %v364_v53 = vpop.f32.mrf.mxu0  ;;  %v556_v54 = vpop.f32.mrf.mxu1 }
 0x129   :  { %638 = vst [vmem:[#allocation2 + $0x230] sm:$0xff] %v364_v53  ;;  %657 = vst [vmem:[#allocation2 + $0x2c8] sm:$0xff] %v556_v54 }
 0x12a   :  { %831 = shalt.err (!%p828_p4)
}
 0x12b   :  { %s844_s26 = smov 384   ;;  %s845_s27 = smov 24  }
 0x12c   :  { %675 = dma.vmem_to_hbm [thread:$0]  %s670_s24, 12288, %s984_s2, [#allocation3], %s844_s26, %s844_s26, %s845_s27  }
 0x12d   :  { %840 = dma.done.wait [#allocation3], 12288  }
 0x12e   :  { %841 = vsyncadd [#allocation3], 4294955008 }
 0x12f   :  { %679 = vsyncpa [#allocation3], 1 }

</bundles_post_ra>
